<compile_context>
chip_gen: v6e
topology: v6e:2x2x1
jax: 0.10.0
libtpu: 0.0.40
codegen_flags: <defaults>
</compile_context>

<pallas_src>
import math

import jax
import jax.numpy as jnp
from jax import lax
from jax.experimental import pallas as pl
from jax.experimental.pallas import tpu as pltpu


_TM_PREFS = (1024, 512, 256, 128, 64, 32, 16, 8)   # batch-rows (sublane) tile
_TN_PREFS = (512, 256, 128)                        # out-features (lane) tile
_TK_PREFS = (512, 256, 128)                        # contraction tile


def _round_up(x, m):
    return (x + m - 1) // m * m


def _vmem_capacity_bytes():
    """Generation-aware VMEM capacity (64 MiB on v7x, 128 MiB on v5e/v6e)."""
    try:
        return int(pltpu.get_tpu_info().vmem_capacity_bytes)
    except Exception:
        return 64 * 1024 * 1024          # conservative fallback (v7x per-TC)


def _device_kind():
    try:
        return jax.devices()[0].device_kind.lower()
    except Exception:
        return ""


def _is_v5e():
    k = _device_kind()
    return ("v5 lite" in k) or ("v5e" in k) or ("v5litepod" in k)


def _kstream_spec(block_shape, index_map, deep):
    """BlockSpec for K-streamed operands; 3-deep buffering on BW-bound v5e."""
    if deep:
        try:
            return pl.BlockSpec(block_shape, index_map,
                                pipeline_mode=pl.Buffered(3))
        except TypeError:
            pass
    return pl.BlockSpec(block_shape, index_map)


def _choose_k_tile(K, L):
    """Contraction tile + padded K.  K must be 128-aligned whenever L > 1 so
    the flattened (M, L*K) view stays block-addressable."""
    if K % 128 == 0:
        K_pad = K
    elif L == 1 and K <= 1024:
        return K, K                      # full-K block on the lane axis (legal)
    else:
        K_pad = _round_up(K, 128)        # zero-pad contraction (exact result)
    for p in _TK_PREFS:
        if K_pad % p == 0:
            return p, K_pad
    return 128, K_pad


def _choose_tiles(M, N, K, L, x_isz, w_isz, o_isz, use_scratch, budget, nbuf_in):
    tk, K_pad = _choose_k_tile(K, L)

    N_pad = _round_up(N, 128)
    tn = 128
    for p in _TN_PREFS:
        if p <= N_pad and N_pad % p == 0:
            tn = p
            break

    def est(tm_, tn_, tk_):
        acc = tm_ * tn_ * 4 if use_scratch else 0
        return (nbuf_in * (tm_ * tk_ * x_isz + tn_ * tk_ * w_isz)
                + 2 * (tm_ * tn_ * o_isz + tn_ * 4) + acc)

    # Shrink lane tiles in the (unlikely) case even tm=8 does not fit.
    while est(8, tn, tk) > budget and tn > 128:
        tn //= 2
    while est(8, tn, tk) > budget and tk > 128 and tk % 256 == 0:
        tk //= 2

    M8 = _round_up(M, 8)
    if M8 <= _TM_PREFS[0] and est(M8, tn, tk) <= budget:
        tm = M8                          # whole (8-padded) M in one block
    else:
        tm = 8
        for p in _TM_PREFS:
            if p <= M8 and est(p, tn, tk) <= budget:
                tm = p
                break
    M_pad = _round_up(M, tm)

    # Guarantee >=2 parallel grid steps so both v7x TensorCores get work.
    if L * (M_pad // tm) * (N_pad // tn) < 2:
        if M_pad >= 16:
            tm = max(8, _round_up(M_pad // 2, 8))
            M_pad = _round_up(M, tm)
        elif N_pad >= 256:
            tn = 128

    return tm, tn, tk, M_pad, N_pad, K_pad


def _make_kernel(has_bias, use_scratch):
    def kernel(*refs):
        if has_bias:
            x_ref, w_ref, b_ref = refs[:3]
            rest = refs[3:]
        else:
            x_ref, w_ref = refs[:2]
            b_ref = None
            rest = refs[2:]
        if use_scratch:
            o_ref, acc_ref = rest
        else:
            (o_ref,) = rest
            acc_ref = o_ref              # f32 output: accumulate in place

        k = pl.program_id(3)

        @pl.when(k == 0)
        def _init():
            acc_ref[...] = jnp.zeros_like(acc_ref)

        x_t = x_ref[...]                 # (TM, TK)
        w_t = w_ref[...]                 # (TN, TK)
        if x_t.dtype != w_t.dtype:       # in-kernel cast: no HBM-side promotion
            ct = jnp.promote_types(x_t.dtype, w_t.dtype)
            x_t = x_t.astype(ct)
            w_t = w_t.astype(ct)

        # Contract on K with the weight consumed in its natural (N, K) layout.
        # TODO(synk): verify via pl.lower_as_mlir that this transposed-RHS
        # contraction does not emit a per-tile XLU transpose on the target
        # generation; if it does, pre-transpose the weight to (K, N) once.
        acc_ref[...] += lax.dot_general(
            x_t, w_t,
            dimension_numbers=(((1,), (1,)), ((), ())),
            preferred_element_type=jnp.float32)

        @pl.when(k == pl.num_programs(3) - 1)
        def _epilogue():
            if use_scratch:
                r = acc_ref[...]
                if has_bias:
                    r = r + b_ref[...].astype(jnp.float32)     # (1, TN) bcast
                o_ref[...] = r.astype(o_ref.dtype)
            else:
                if has_bias:
                    o_ref[...] = o_ref[...] + b_ref[...].astype(o_ref.dtype)

    return kernel


def linear_forward(x, weight, bias=None):
    """Pallas equivalent of Linear.forward.

    x      : (*batch_dims, *leading_features, in_features)
    weight : (*leading_features, out_features, in_features)
    bias   : (*leading_features, out_features) or None
    returns: (*batch_dims, *leading_features, out_features)
    """
    *lead, N, K = weight.shape
    lead = tuple(lead)
    lrank = len(lead)

    assert x.shape[-1] == K, "in_features mismatch"
    assert x.shape[x.ndim - 1 - lrank:x.ndim - 1] == lead, \
        "expected trailing x dims (before in_features) to equal leading_features"
    batch_shape = x.shape[:x.ndim - 1 - lrank]

    M = int(math.prod(batch_shape)) if batch_shape else 1
    L = int(math.prod(lead)) if lead else 1
    has_bias = bias is not None

    out_dtype = jnp.result_type(x.dtype, weight.dtype)
    use_scratch = jnp.dtype(out_dtype) != jnp.dtype(jnp.float32)

    x_isz = jnp.dtype(x.dtype).itemsize
    w_isz = jnp.dtype(weight.dtype).itemsize
    o_isz = jnp.dtype(out_dtype).itemsize

    # Generation-aware VMEM budgeting (v7x 64 MiB vs v5e/v6e 128 MiB).
    cap = _vmem_capacity_bytes()
    budget = int(0.375 * cap)                                  # per-step working set
    vmem_limit = min(max(32 * 1024 * 1024, int(0.60 * cap)),
                     cap - 8 * 1024 * 1024)

    deep_pref = _is_v5e()
    nbuf_in = 3 if deep_pref else 2
    tm, tn, tk, M_pad, N_pad, K_pad = _choose_tiles(
        M, N, K, L, x_isz, w_isz, o_isz, use_scratch, budget, nbuf_in)
    gm, gn, gk = M_pad // tm, N_pad // tn, K_pad // tk
    deep = deep_pref and gk >= 4                                # only when K streams
    grid = (L, gm, gn, gk)

    # ---- flat lane-dense 2-D views (pure reshapes; pads only when unaligned) ----
    x3 = x.reshape(M, L, K)
    if (M_pad, K_pad) != (M, K):
        x3 = jnp.pad(x3, ((0, M_pad - M), (0, 0), (0, K_pad - K)))
    x2 = x3.reshape(M_pad, L * K_pad)

    w3 = weight.reshape(L, N, K)
    if (N_pad, K_pad) != (N, K):
        w3 = jnp.pad(w3, ((0, 0), (0, N_pad - N), (0, K_pad - K)))
    w2 = w3.reshape(L * N_pad, K_pad)

    in_specs = [
        _kstream_spec((tm, tk), lambda l, m, n, k: (m, l * gk + k), deep),
        _kstream_spec((tn, tk), lambda l, m, n, k: (l * gn + n, k), deep),
    ]
    operands = [x2, w2]
    if has_bias:
        b2 = bias.reshape(L, N)
        if N_pad != N:
            b2 = jnp.pad(b2, ((0, 0), (0, N_pad - N)))
        b2 = b2.reshape(1, L * N_pad)                          # original dtype
        in_specs.append(pl.BlockSpec((1, tn), lambda l, m, n, k: (0, l * gn + n)))
        operands.append(b2)

    out_specs = pl.BlockSpec((tm, tn), lambda l, m, n, k: (m, l * gn + n))
    scratch_shapes = [pltpu.VMEM((tm, tn), jnp.float32)] if use_scratch else []

    cost = pl.CostEstimate(
        flops=2 * M * L * N * K,
        transcendentals=0,
        bytes_accessed=(M * L * K * x_isz + L * N * K * w_isz
                        + (L * N * jnp.dtype(bias.dtype).itemsize if has_bias else 0)
                        + M * L * N * o_isz))

    out = pl.pallas_call(
        _make_kernel(has_bias, use_scratch),
        out_shape=jax.ShapeDtypeStruct((M_pad, L * N_pad), out_dtype),
        grid_spec=pltpu.PrefetchScalarGridSpec(
            num_scalar_prefetch=0,
            grid=grid,
            in_specs=in_specs,
            out_specs=out_specs,
            scratch_shapes=scratch_shapes),
        compiler_params=pltpu.CompilerParams(
            dimension_semantics=("parallel", "parallel", "parallel", "arbitrary"),
            vmem_limit_bytes=vmem_limit),
        cost_estimate=cost,
    )(*operands)

    out = out.reshape(M_pad, L, N_pad)[:M, :, :N]
    return out.reshape(*batch_shape, *lead, N)


def make_linear_params(key, *, in_features, out_features,
                       leading_features=(), bias=True, dtype=jnp.float32):
    """Deterministic re-implementation of Linear.reset_parameters()."""
    bound = in_features ** (-0.5)
    w = jax.random.uniform(
        key, (*leading_features, out_features, in_features),
        dtype=jnp.float32, minval=-bound, maxval=bound).astype(dtype)
    b = jnp.zeros((*leading_features, out_features), dtype=dtype) if bias else None
    return w, b


if __name__ == "__main__":
    key = jax.random.PRNGKey(0)

    def check(batch_shape, leading_features, in_features, out_features, use_bias,
              dtype, k, tol):
        k_w, k_x = jax.random.split(k)
        weight, b = make_linear_params(
            k_w, in_features=in_features, out_features=out_features,
            leading_features=leading_features, bias=use_bias, dtype=dtype)
        x = jax.random.normal(
            k_x, (*batch_shape, *leading_features, in_features)).astype(dtype)

        y = jax.block_until_ready(linear_forward(x, weight, b))

        y_ref = jnp.einsum('...x,...yx->...y',
                           x.astype(jnp.float32), weight.astype(jnp.float32),
                           precision=lax.Precision.HIGHEST)
        if b is not None:
            y_ref = y_ref + b.astype(jnp.float32)
        y_ref = y_ref.astype(y.dtype)

        assert y.shape == (*batch_shape, *leading_features, out_features), y.shape
        assert jnp.allclose(y.astype(jnp.float32), y_ref.astype(jnp.float32),
                            atol=tol, rtol=tol), \
            f"mismatch lead={leading_features} bias={use_bias} dtype={dtype}"

    k1, k2, k3, k4 = jax.random.split(key, 4)
    # per-head projection weights (L on the grid), non-128-aligned N and K
    check((2, 8), (4,), 32, 24, True, jnp.float32, k1, 1e-3)
    # plain Linear with bias (f32 -> accumulate directly into the output block)
    check((2, 8), (), 32, 16, True, jnp.float32, k2, 1e-3)
    # plain Linear, no bias (bias DMA skipped), lane-dense N = 128
    check((2, 8), (), 32, 128, False, jnp.float32, k3, 1e-3)
    # bf16 path (f32 scratch accumulator + downcast), multi-dim leading_features
    check((2, 4), (2, 3), 32, 24, True, jnp.bfloat16, k4, 2e-2)

    print("KERNEL_OK")
</pallas_src>

<mosaic_0001>
module attributes {stable_mosaic.version = 11 : i64} {
  func.func @kernel(%arg0: i32, %arg1: i32, %arg2: i32, %arg3: i32, %arg4: memref<16x128xf32, #tpu.memory_space<vmem>>, %arg5: memref<128x128xf32, #tpu.memory_space<vmem>>, %arg6: memref<1x128xf32, #tpu.memory_space<vmem>>, %arg7: memref<16x128xf32, #tpu.memory_space<vmem>>) attributes {dimension_semantics = [#tpu.dimension_semantics<parallel>, #tpu.dimension_semantics<parallel>, #tpu.dimension_semantics<parallel>, #tpu.dimension_semantics<arbitrary>], iteration_bounds = array<i64: 4, 1, 1, 1>, scalar_prefetch = 0 : i64, scratch_operands = 0 : i64, tpu.core_type = #tpu.core_type<tc>, window_params = [{transform_indices = @transform_0, window_bounds = array<i64: 16, 128>}, {transform_indices = @transform_1, window_bounds = array<i64: 128, 128>}, {transform_indices = @transform_2, window_bounds = array<i64: 1, 128>}, {transform_indices = @transform_3, window_bounds = array<i64: 16, 128>}]} {
    %c0_i32 = arith.constant 0 : i32
    %0 = arith.cmpi eq, %arg3, %c0_i32 : i32
    %1 = arith.extui %0 : i1 to i32
    %c0_i32_0 = arith.constant 0 : i32
    %2 = arith.cmpi ne, %1, %c0_i32_0 : i32
    scf.if %2 {
      %cst_10 = arith.constant 0.000000e+00 : f32
      %12 = vector.broadcast %cst_10 : f32 to vector<16x128xf32>
      %c0_11 = arith.constant 0 : index
      %c0_12 = arith.constant 0 : index
      %13 = vector.load %arg7[%c0_11, %c0_12] : memref<16x128xf32, #tpu.memory_space<vmem>>, vector<16x128xf32>
      tpu.vector_store %arg7[%c0_11, %c0_12], %12 {strides = array<i32>} : memref<16x128xf32, #tpu.memory_space<vmem>>, vector<16x128xf32>,
    } else {
    }
    %c0 = arith.constant 0 : index
    %c0_1 = arith.constant 0 : index
    %3 = vector.load %arg4[%c0, %c0_1] : memref<16x128xf32, #tpu.memory_space<vmem>>, vector<16x128xf32>
    %c0_2 = arith.constant 0 : index
    %c0_3 = arith.constant 0 : index
    %4 = vector.load %arg5[%c0_2, %c0_3] : memref<128x128xf32, #tpu.memory_space<vmem>>, vector<128x128xf32>
    %c0_4 = arith.constant 0 : index
    %c0_5 = arith.constant 0 : index
    %5 = vector.load %arg7[%c0_4, %c0_5] : memref<16x128xf32, #tpu.memory_space<vmem>>, vector<16x128xf32>
    %cst = arith.constant dense<0.000000e+00> : vector<16x128xf32>
    %6 = tpu.matmul %3, %4, %cst {dimension_numbers = #tpu.dot_dimension_numbers<[1], [1], [0], [0], [0, 0, 1, 0], [], []>} : vector<16x128xf32>, vector<128x128xf32>, vector<16x128xf32> -> vector<16x128xf32>
    %7 = arith.addf %5, %6 : vector<16x128xf32>
    %c0_6 = arith.constant 0 : index
    %c0_7 = arith.constant 0 : index
    %8 = vector.load %arg7[%c0_6, %c0_7] : memref<16x128xf32, #tpu.memory_space<vmem>>, vector<16x128xf32>
    tpu.vector_store %arg7[%c0_6, %c0_7], %7 {strides = array<i32>} : memref<16x128xf32, #tpu.memory_space<vmem>>, vector<16x128xf32>,
    %c0_i32_8 = arith.constant 0 : i32
    %9 = arith.cmpi eq, %arg3, %c0_i32_8 : i32
    %10 = arith.extui %9 : i1 to i32
    %c0_i32_9 = arith.constant 0 : i32
    %11 = arith.cmpi ne, %10, %c0_i32_9 : i32
    scf.if %11 {
      %c0_10 = arith.constant 0 : index
      %c0_11 = arith.constant 0 : index
      %12 = vector.load %arg7[%c0_10, %c0_11] : memref<16x128xf32, #tpu.memory_space<vmem>>, vector<16x128xf32>
      %c0_12 = arith.constant 0 : index
      %c0_13 = arith.constant 0 : index
      %13 = vector.load %arg6[%c0_12, %c0_13] : memref<1x128xf32, #tpu.memory_space<vmem>>, vector<1x128xf32>
      %14 = vector.broadcast %13 : vector<1x128xf32> to vector<16x128xf32>
      %15 = arith.addf %12, %14 : vector<16x128xf32>
      %c0_14 = arith.constant 0 : index
      %c0_15 = arith.constant 0 : index
      %16 = vector.load %arg7[%c0_14, %c0_15] : memref<16x128xf32, #tpu.memory_space<vmem>>, vector<16x128xf32>
      tpu.vector_store %arg7[%c0_14, %c0_15], %15 {strides = array<i32>} : memref<16x128xf32, #tpu.memory_space<vmem>>, vector<16x128xf32>,
    } else {
    }
    return
  }
  func.func @transform_0(%arg0: i32, %arg1: i32, %arg2: i32, %arg3: i32) -> (i32, i32) {
    %c1_i32 = arith.constant 1 : i32
    %0 = arith.muli %arg0, %c1_i32 : i32
    %1 = arith.addi %0, %arg3 : i32
    %c0_i32 = arith.constant 0 : i32
    return %arg1, %1 : i32, i32
  }
  func.func @transform_1(%arg0: i32, %arg1: i32, %arg2: i32, %arg3: i32) -> (i32, i32) {
    %c1_i32 = arith.constant 1 : i32
    %0 = arith.muli %arg0, %c1_i32 : i32
    %1 = arith.addi %0, %arg2 : i32
    %c0_i32 = arith.constant 0 : i32
    return %1, %arg3 : i32, i32
  }
  func.func @transform_2(%arg0: i32, %arg1: i32, %arg2: i32, %arg3: i32) -> (i32, i32) {
    %c1_i32 = arith.constant 1 : i32
    %0 = arith.muli %arg0, %c1_i32 : i32
    %1 = arith.addi %0, %arg2 : i32
    %c0_i32 = arith.constant 0 : i32
    %c0_i32_0 = arith.constant 0 : i32
    return %c0_i32, %1 : i32, i32
  }
  func.func @transform_3(%arg0: i32, %arg1: i32, %arg2: i32, %arg3: i32) -> (i32, i32) {
    %c1_i32 = arith.constant 1 : i32
    %0 = arith.muli %arg0, %c1_i32 : i32
    %1 = arith.addi %0, %arg2 : i32
    %c0_i32 = arith.constant 0 : i32
    return %arg1, %1 : i32, i32
  }
}

</mosaic_0001>

<bundles_post_ra>
// kernel: tpu_custom_call.1
= control target key start
LH: loop header
LB: loop body
LE: loop exit
PB: predicated region body
PF: predicated region fallthrough
CT: control target
= control target key end

     0   :  { %s1156_s0 = inlined_call_operand.hbm [shape: f32[16,512], index: 0, kind: input, shape index: {}]   ;;  %s1157_s1 = inlined_call_operand.hbm [shape: f32[512,128], index: 1, kind: input, shape index: {}]   ;;  %s1158_s2 = inlined_call_operand.hbm [shape: f32[1,512], index: 2, kind: input, shape index: {}]   ;;  %s1159_s3 = inlined_call_operand.hbm [shape: f32[16,512], index: 3, kind: output, shape index: {}]  }
   0x1   :  { %1163 = sst [smem:[#allocation15_spill]] %s1156_s0 }
   0x2   :  { %1164 = sst [smem:[#allocation16_spill]] %s1157_s1 }
   0x3   :  { %8 = vsyncpa [#allocation3], 0 }
   0x4   :  { %10 = vsyncpa [#allocation3 + $0x1], 0 }
   0x5   :  { %11 = vsyncpa [#allocation6], 0 }
   0x6   :  { %13 = vsyncpa [#allocation6 + $0x1], 0 }
   0x7   :  { %14 = vsyncpa [#allocation4], 0 }
   0x8   :  { %16 = vsyncpa [#allocation4 + $0x1], 0  ;;  %s940_s12 = smov 0   ;;  %s942_s13 = smov 0  }
   0x9   :  { %s944_s14 = smov 0   ;;  %s946_s15 = smov 0  }
   0xa   :  { %s948_s16 = smov 0   ;;  %s950_s17 = smov 0  }
   0xb LB: > { %1165 = sst [smem:[#allocation12_spill]] %s896_s14  ;;  %s971_s18 = sadd.s32 4294967295, %s908_s17   ;;  %s908_s17 = sphi %s950_s17, %s22_s17   ;;  %s904_s16 = sphi %s948_s16, %s1182_s16   ;;  %s900_s15 = sphi %s946_s15, %s1181_s15   ;;  %s896_s14 = sphi %s944_s14, %s1177_s14   ;;  %s892_s13 = sphi %s942_s13, %s1180_s13   ;;  %s888_s12 = sphi %s940_s12, %s1179_s12  }
   0xc   : > { %s589_s19 = sadd.s32 4294967294, %s908_s17   ;;  %s48_s20 = sadd.s32 1, %s904_s16 }
   0xd   : > { %s59_s21 = sadd.s32 1, %s896_s14  ;;  %p50_p0 = scmp.ge.s32.totalorder %s48_s20, 4 }
   0xe   : > { %p66_p1 = scmp.ne.s32.totalorder %s896_s14, %s892_s13  ;;  %p67_p2 = scmp.eq.s32.totalorder %s908_s17, 0 }
   0xf   : > { %p72_p3 = scmp.ne.s32.totalorder %s892_s13, %s888_s12  ;;  %s1184_s20 = smov (%p50_p0, %s48_s20), 0 }
  0x10   : > { %1166 = sst [smem:[#allocation13_spill]] %s1184_s20  ;;  %p68_p4 = por %p67_p2, %p66_p1 }
  0x11   : > { %p73_p5 = scmp.eq.s32.totalorder %s971_s18, 0  ;;  %s55_s22 = ssub.s32 %s904_s16, %s1184_s20 }
  0x12   : > { %p158_p6 = scmp.eq.s32.totalorder %s971_s18, 3  ;;  %p57_p7 = scmp.eq.s32.totalorder %s55_s22, 0 }
  0x13   : > { %p987_p8 = por %p73_p5, %p72_p3  ;;  %p164_p10 = scmp.eq.s32.totalorder %s589_s19, 3 }
  0x14   : > { %p991_p9 = por %p158_p6, %p66_p1  ;;  %p683_p12 = scmp.lt.s32.totalorder %s908_s17, 4 }
  0x15   : > { %s996_s25 = scalar_select %p57_p7, %s896_s14, %s59_s21  }
  0x16   : > { %p998_p11 = por %p164_p10, %p72_p3  ;;  %s1004_s27 = sand.u32 1, %s896_s14  }
  0x17   : > { %1169 = sst [smem:[#allocation14_spill]] %s996_s25  ;;  %p1006_p13 = pnand %p683_p12, %p68_p4 }
  0x18   : > { %s208_s29 = sand.u32 1, %s908_s17   ;;  %s594_s30 = sshll.u32 %s1004_s27, 7 }
  0x19   : > { %s607_s4 = sshll.u32 %s904_s16, 11  ;;  %s212_s5 = scalar_lea.vmem [#allocation5], %s594_s30 }
  0x1a   : > { %s221_s6 = sshll.u32 %s212_s5, 4  ;;  %s1172_s1 = sld [smem:[#allocation16_spill]]  ;;  %s222_s6 = int_to_ptr.vmem [resolvable:$true] %s221_s6 }
  0x1b   : > { %s1016_s10 = scalar_lea.sflag [#allocation6], %s208_s29  ;;  %p742_p0 = pneg %p1006_p13 }
  0x1c   : > { %s753_s11 = scalar_lea.vmem %s222_s6, 2048  ;;  %s910_s19 = smov [#allocation5]  }
  0x1d   : > { %p754_p1 = scmp.ne.s32.totalorder %s222_s6, %s753_s11  ;;  %s758_s21 = sshll.u32 %s910_s19, 4  ;;  %s759_s21 = int_to_ptr.vmem [resolvable:$false] %s758_s21 }
  0x1e   : > { %s760_s22 = scalar_lea.vmem %s759_s21, 4096  ;;  %p761_p4 = scmp.lt.s32.totalorder %s222_s6, %s759_s21 }
  0x1f   : > { %p756_p2 = pnand %p754_p1, %p742_p0  ;;  %p762_p5 = scmp.lt.s32.totalorder %s760_s22, %s753_s11 }
  0x20   : > { %s220_s9 = scalar_lea.hbm %s1172_s1, %s607_s4 }
  0x21   : > { %p757_p3 = pneg %p756_p2  ;;  %p763_p6 = por %p762_p5, %p761_p4 }
  0x23   : > { %p764_p7 = pnand %p763_p6, %p757_p3 }
  0x25   : > { %767 = shalt.err (!%p764_p7)
}
  0x26   : > { %s1161_s30 = smov 128   ;;  %s912_s29 = smov 8  }
  0x27   : > { %675 = dma.hbm_to_vmem [thread:$0]  (!%p1006_p13), %s220_s9, 2048, %s222_s6, %s1016_s10, %s1161_s30, %s1161_s30, %s912_s29  }
  0x28   : > { %p598_p10 = scmp.ge.s32.totalorder %s908_s17, 1  ;;  %p247_p12 = scmp.lt.s32.totalorder %s908_s17, 5 }
  0x29   : > { %s592_s5 = sshll.u32 %s1004_s27, 4  ;;  %s593_s7 = sshll.u32 %s904_s16, 7 }
  0x2a   : > { %p1031_p1 = pnand %p598_p10, %p247_p12  ;;  %s1174_s0 = sld [smem:[#allocation15_spill]] }
  0x2b   : > { %s188_s21 = scalar_lea.vmem [#allocation2], %s592_s5  ;;  %s185_s1 = scalar_lea.sflag [#allocation3], %s1004_s27 }
  0x2c   : > { %s198_s22 = sshll.u32 %s188_s21, 4  ;;  %s913_s6 = smov [#allocation2]   ;;  %s199_s22 = int_to_ptr.vmem [resolvable:$true] %s198_s22 }
  0x2d   : > { %s781_s20 = scalar_lea.vmem %s199_s22, 256  ;;  %s786_s9 = sshll.u32 %s913_s6, 4  ;;  %s787_s9 = int_to_ptr.vmem [resolvable:$false] %s786_s9 }
  0x2e   : > { %p782_p2 = scmp.ne.s32.totalorder %s199_s22, %s781_s20  ;;  %s788_s30 = scalar_lea.vmem %s787_s9, 512 }
  0x2f   : > { %p789_p5 = scmp.lt.s32.totalorder %s199_s22, %s787_s9  ;;  %p790_p6 = scmp.lt.s32.totalorder %s788_s30, %s781_s20 }
  0x30   : > { %s197_s19 = scalar_lea.hbm %s1174_s0, %s593_s7  ;;  %p784_p3 = pnand %p782_p2, %p742_p0 }
  0x31   : > { %p791_p7 = por %p790_p6, %p789_p5 }
  0x32   : > { %p785_p4 = pneg %p784_p3 }
  0x34   : > { %p792_p10 = pnand %p791_p7, %p785_p4 }
  0x36   : > { %795 = shalt.err (!%p792_p10)
}
  0x37   : > { %s914_s7 = smov 512   ;;  %s1175_s5 = smov 128  }
  0x38   : > { %672 = dma.hbm_to_vmem [thread:$0]  (!%p1006_p13), %s197_s19, 256, %s199_s22, %s185_s1, %s914_s7, %s1175_s5, %s912_s29  }
  0x39   : > { %s597_s8 = sshll.u32 %s904_s16, 4  ;;  %s234_s11 = scalar_lea.vmem [#allocation7], %s1004_s27 }
  0x3a   : > { %s242_s21 = sshll.u32 %s234_s11, 4  ;;  %s240_s9 = scalar_lea.hbm %s1158_s2, %s597_s8  ;;  %s243_s21 = int_to_ptr.vmem [resolvable:$true] %s242_s21 }
  0x3b   : > { %s809_s20 = scalar_lea.vmem %s243_s21, 16  ;;  %s915_s30 = smov [#allocation7]  }
  0x3c   : > { %p810_p12 = scmp.ne.s32.totalorder %s243_s21, %s809_s20  ;;  %s814_s25 = sshll.u32 %s915_s30, 4  ;;  %s815_s25 = int_to_ptr.vmem [resolvable:$false] %s814_s25 }
  0x3d   : > { %s816_s14 = scalar_lea.vmem %s815_s25, 32  ;;  %p817_p4 = scmp.lt.s32.totalorder %s243_s21, %s815_s25 }
  0x3e   : > { %p812_p2 = pnand %p810_p12, %p742_p0  ;;  %p818_p5 = scmp.lt.s32.totalorder %s816_s14, %s809_s20 }
  0x40   : > { %p813_p3 = pneg %p812_p2  ;;  %p819_p6 = por %p818_p5, %p817_p4 }
  0x42   : > { %p820_p7 = pnand %p819_p6, %p813_p3 }
  0x44   : > { %823 = shalt.err (!%p820_p7)
}
  0x45   : > { %678 = dma.hbm_to_vmem [thread:$0]  (!%p1006_p13), %s240_s9, 16, %s243_s21, %s1016_s10  }
  0x46   : > { %251 = sbr.rel (%p1031_p1) target bundleno = 356 (0x164), region = 32  ;;  %s1062_s0 = sand.u32 (!%p1031_p1), 1, %s892_s13  }
  0x47   : > { %s599_s1 = sshll.u32 (!%p1031_p1), %s1062_s0, 4  ;;  %s254_s25 = scalar_lea.sflag (!%p1031_p1), [#allocation3], %s1062_s0 }
  0x48   : > { %s1068_s14 = scalar_lea.vmem (!%p1031_p1), [#allocation2], %s599_s1 }
  0x4b   : > { %875 = dma.done.wait (%p987_p8), %s254_s25, 256  }
  0x4c   : > { %877 = vsyncadd (%p987_p8), %s254_s25, 4294967040  ;;  %s262_s27 = sand.u32 1, %s971_s18   ;;  %s600_s28 = sshll.u32 %s1062_s0, 7 }
  0x4d   : > { %s263_s10 = scalar_lea.sflag [#allocation6], %s262_s27  ;;  %s1076_s29 = scalar_lea.vmem [#allocation5], %s600_s28 }
  0x4e   : > { %879 = dma.done.wait (%p987_p8), %s263_s10, 2064  }
  0x4f   : > { %881 = vsyncadd (%p987_p8), %s263_s10, 4294965232  ;;  %v336_v0 = vld [vmem:[%s1076_s29 + $0x78] sm:$0xff]  ;;  %v335_v1 = vld [vmem:[%s1076_s29 + $0x70] sm:$0xff]  ;;  %s274_s18 = scalar_lea.vmem [#allocation7], %s1062_s0  ;;  %s604_s23 = sshll.u32 %s900_s15, 7 }
  0x50   : > { %626 = vmatprep.subr.mxu0 %v336_v0  ;;  %v334_v2 = vld [vmem:[%s1076_s29 + $0x68] sm:$0xff]  ;;  %v319_v3 = vld [vmem:[%s1068_s14] sm:$0xff]  ;;  %v332_v5 = vld [vmem:[%s1076_s29 + $0x58] sm:$0xff]  ;;  %s305_s4 = scalar_lea.vmem [#allocation8], %s599_s1  ;;  %s1107_s5 = scalar_lea.hbm %s1159_s3, %s604_s23 }
  0x51   : > { %627 = vmatpush3.xpose.msra.mxu0 %v336_v0  ;;  %658 = vmatprep.mubr.f32.mxu0 %v319_v3  ;;  %v333_v4 = vld [vmem:[%s1076_s29 + $0x60] sm:$0xff]  ;;  %v331_v6 = vld [vmem:[%s1076_s29 + $0x50] sm:$0xff]  ;;  %v330_v7 = vld [vmem:[%s1076_s29 + $0x48] sm:$0xff]  ;;  %s451_s19 = sshll.u32 %s305_s4, 4  ;;  %s435_s8 = scalar_lea.sflag [#allocation4], %s1062_s0  ;;  %s1109_s19 = int_to_ptr.vmem [resolvable:$true] %s451_s19 }
  0x52   : > { %628 = vmatprep.subr.mxu0 %v335_v1  ;;  %v329_v8 = vld [vmem:[%s1076_s29 + $0x40] sm:$0xff]  ;;  %v328_v9 = vld [vmem:[%s1076_s29 + $0x38] sm:$0xff]  ;;  %v327_v10 = vld [vmem:[%s1076_s29 + $0x30] sm:$0xff]  ;;  %s824_s15 = scalar_lea.vmem %s1109_s19, 256  ;;  %s916_s11 = smov [#allocation8]  }
  0x53   : > { %v326_v11 = vld [vmem:[%s1076_s29 + $0x28] sm:$0xff]  ;;  %v325_v12 = vld [vmem:[%s1076_s29 + $0x20] sm:$0xff]  ;;  %v324_v13 = vld [vmem:[%s1076_s29 + $0x18] sm:$0xff]  ;;  %p825_p8 = scmp.ne.s32.totalorder %s1109_s19, %s824_s15  ;;  %s828_s21 = sshll.u32 %s916_s11, 4  ;;  %s829_s21 = int_to_ptr.vmem [resolvable:$false] %s828_s21 }
  0x54   : > { %v323_v14 = vld [vmem:[%s1076_s29 + $0x10] sm:$0xff]  ;;  %v322_v15 = vld [vmem:[%s1076_s29 + $0x8] sm:$0xff]  ;;  %v321_v16 = vld [vmem:[%s1076_s29] sm:$0xff]  ;;  %s830_s6 = scalar_lea.vmem %s829_s21, 512  ;;  %p831_p1 = scmp.lt.s32.totalorder %s1109_s19, %s829_s21 }
  0x55   : > { %629 = vmatpush3.xpose.msra.mxu0 %v335_v1  ;;  %v320_v17 = vld [vmem:[%s1068_s14 + $0x8] sm:$0xff]  ;;  %v602_v19 = vld [vmem:[%s274_s18] ss:$0 sm:$0xff]  ;;  %p826_p13 = pnand %p825_p8, %p991_p9  ;;  %p832_p10 = scmp.lt.s32.totalorder %s830_s6, %s824_s15 }
  0x56   : > { %630 = vmatprep.subr.mxu0 %v334_v2 }
  0x57   : > { %p827_p0 = pneg %p826_p13  ;;  %p833_p12 = por %p832_p10, %p831_p1 }
  0x59   : > { %631 = vmatpush3.xpose.msra.mxu0 %v334_v2  ;;  %p834_p2 = pnand %p833_p12, %p827_p0 }
  0x5a   : > { %632 = vmatprep.subr.mxu0 %v333_v4 }
  0x5d   : > { %633 = vmatpush3.xpose.msra.mxu0 %v333_v4 }
  0x5e   : > { %634 = vmatprep.subr.mxu0 %v332_v5 }
  0x61   : > { %635 = vmatpush3.xpose.msra.mxu0 %v332_v5 }
  0x62   : > { %636 = vmatprep.subr.mxu0 %v331_v6 }
  0x65   : > { %637 = vmatpush3.xpose.msra.mxu0 %v331_v6 }
  0x66   : > { %638 = vmatprep.subr.mxu0 %v330_v7 }
  0x69   : > { %639 = vmatpush3.xpose.msra.mxu0 %v330_v7 }
  0x6a   : > { %640 = vmatprep.subr.mxu0 %v329_v8 }
  0x6d   : > { %641 = vmatpush3.xpose.msra.mxu0 %v329_v8 }
  0x6e   : > { %642 = vmatprep.subr.mxu0 %v328_v9 }
  0x71   : > { %643 = vmatpush3.xpose.msra.mxu0 %v328_v9 }
  0x72   : > { %644 = vmatprep.subr.mxu0 %v327_v10 }
  0x75   : > { %645 = vmatpush3.xpose.msra.mxu0 %v327_v10 }
  0x76   : > { %646 = vmatprep.subr.mxu0 %v326_v11 }
  0x79   : > { %647 = vmatpush3.xpose.msra.mxu0 %v326_v11 }
  0x7a   : > { %648 = vmatprep.subr.mxu0 %v325_v12 }
  0x7d   : > { %649 = vmatpush3.xpose.msra.mxu0 %v325_v12 }
  0x7e   : > { %650 = vmatprep.subr.mxu0 %v324_v13 }
  0x81   : > { %651 = vmatpush3.xpose.msra.mxu0 %v324_v13 }
  0x82   : > { %652 = vmatprep.subr.mxu0 %v323_v14 }
  0x85   : > { %653 = vmatpush3.xpose.msra.mxu0 %v323_v14 }
  0x86   : > { %654 = vmatprep.subr.mxu0 %v322_v15 }
  0x89   : > { %655 = vmatpush3.xpose.msra.mxu0 %v322_v15 }
  0x8a   : > { %656 = vmatprep.subr.mxu0 %v321_v16 }
  0x8d   : > { %657 = vmatpush3.xpose.msra.mxu0 %v321_v16 }
  0x90   : > { %659 = vmatmul.mubr.f32.vlgmr.msra.gmra.mxu0 %v320_v17 }
 0x150   : > { %v660_v18 = vpop.f32.mrf.mxu0 }
 0x151   : > { %v431_v21 = vadd.f32 %v660_v18, %v602_v19 }
 0x152   : > { %v405_v20 = vpop.f32.mrf.mxu0 }
 0x153   : > { %433 = vst [vmem:[%s305_s4 + $0x8] sm:$0xff] %v431_v21  ;;  %v430_v22 = vadd.f32 %v602_v19, %v405_v20 }
 0x155   : > { %432 = vst [vmem:[%s305_s4] sm:$0xff] %v430_v22 }
 0x156   : > { %837 = shalt.err (!%p834_p2)
}
 0x157   : > { %s838_s9 = scalar_lea.hbm %s1107_s5, 256  ;;  %s842_s1 = scalar_lea.hbm %s1159_s3, 1024 }
 0x158   : > { %p839_p3 = scmp.ne.s32.totalorder %s1107_s5, %s838_s9  ;;  %p843_p6 = scmp.lt.s32.totalorder %s1107_s5, %s1159_s3 }
 0x159   : > { %p844_p7 = scmp.lt.s32.totalorder %s842_s1, %s838_s9 }
 0x15a   : > { %p840_p4 = pnand %p839_p3, %p991_p9 }
 0x15b   : > { %p845_p8 = por %p844_p7, %p843_p6 }
 0x15c   : > { %p841_p5 = pneg %p840_p4 }
 0x15e   : > { %p846_p13 = pnand %p845_p8, %p841_p5 }
 0x160   : > { %849 = shalt.err (!%p846_p13)
}
 0x161   : > { %s917_s27 = smov 128   ;;  %s918_s28 = smov 512  }
 0x162   : > { %s919_s10 = smov 8  }
 0x163   : > { %667 = dma.vmem_to_hbm [thread:$0]  (%p991_p9), %s1109_s19, 256, %s1107_s5, %s435_s8, %s917_s27, %s918_s28, %s919_s10  }
 0x164 PF: > { %p684_p0 = scmp.ge.s32.totalorder %s908_s17, 2  ;;  %s466_s29 = sand.u32 1, %s888_s12  }
 0x165   : > { %s467_s18 = scalar_lea.sflag [#allocation4], %s466_s29 }
 0x166   : > { %p680_p1 = pnand %p684_p0, %p998_p11 }
 0x168   : > { %p681_p10 = pneg %p680_p1 }
 0x16a   : > { %883 = dma.done.wait (%p681_p10), %s467_s18, 256  }
 0x16b   : > { %885 = vsyncadd (%p681_p10), %s467_s18, 4294967040  ;;  %s22_s17 = sadd.s32 1, %s908_s17   ;;  %s1176_s23 = sld [smem:[#allocation12_spill]] }
 0x16c   : > { %p19_p12 = scmp.ge.s32.totalorder %s22_s17, 6   ;;  %s1177_s14 = sld [smem:[#allocation14_spill]] }
 0x16d   : > { %s1178_s24 = sld [smem:[#allocation13_spill]]  ;;  %s1179_s12 = smov %s892_s13 }
 0x16e   : > { %s1181_s15 = smov %s904_s16 }
 0x16f   :  { %21 = sbr.rel (!%p19_p12) target bundleno = 11 (0xb), region = 109 }
 0x171   : > { %s1180_s13 = smov %s1176_s23 }
 0x173   : > { %s1182_s16 = smov %s1178_s24 }
 0x174   :  { %472 = vsyncpa [#allocation3], 1 }
 0x175   :  { %474 = vsyncpa [#allocation3 + $0x1], 1 }
 0x176   :  { %475 = vsyncpa [#allocation6], 1 }
 0x177   :  { %477 = vsyncpa [#allocation6 + $0x1], 1 }
 0x178   :  { %478 = vsyncpa [#allocation4], 1 }
 0x179   :  { %480 = vsyncpa [#allocation4 + $0x1], 1 }

</bundles_post_ra>
